<compile_context>
chip_gen: v7x
topology: tpu7x:2x2x1
jax: 0.10.0
libtpu: 0.0.40
codegen_flags: <defaults>
</compile_context>

<pallas_src>
import functools

import jax
import jax.numpy as jnp
from jax.experimental import pallas as pl
from jax.experimental.pallas import tpu as pltpu

_EPS = 1e-5


def _round_up(x, m):
    return ((x + m - 1) // m) * m


@functools.lru_cache(maxsize=None)
def _vmem_limit_bytes():
    """Generation-aware scoped-VMEM budget (~3/4 of physical, capped)."""
    cap = 64 * 1024 * 1024                      # conservative fallback (v7x)
    try:
        info = pltpu.get_tpu_info()
        cap = int(getattr(info, "vmem_capacity_bytes", cap)) or cap
    except Exception:
        pass
    return min(cap * 3 // 4, 112 * 1024 * 1024)


def _pick_tile_m(m, cap):
    """Largest divisor of m (multiple of 8, <= cap); prefer >= 2 blocks."""
    cap = min(cap, m)
    divs = [d for d in range(8, cap + 1, 8) if m % d == 0]
    if not divs:
        return None
    multi = [d for d in divs if m // d >= 2]
    return max(multi) if multi else max(divs)


def _pick_row_block(ho, wo, tn):
    """Largest divisor of ho whose (rb*wo, tn) f32 accumulator stays small."""
    cap = min(1024, max(1, (2 * 1024 * 1024) // (4 * max(tn, 1))))
    rb = 1
    for cand in range(2, ho + 1):
        if ho % cand == 0 and cand * wo <= cap:
            rb = cand
    return rb


# ----------------------------------------------------------------------------
# Kernel 1: row-tiled matmul with whole (K, N) weight resident in VMEM.
#   out = [relu]( x @ W + bias [+ skip] )   (bf16 MXU, f32 accumulate)
#   grid = (M tiles,); weight/bias BlockSpec indices are constant -> DMA'd once.
# ----------------------------------------------------------------------------
def _mm_bias_kernel(x_ref, w_ref, b_ref, o_ref, *, relu):
    r = jnp.dot(x_ref[...], w_ref[...],
                preferred_element_type=jnp.float32) + b_ref[...]
    if relu:
        r = jnp.maximum(r, 0.0)
    o_ref[...] = r.astype(o_ref.dtype)


def _mm_bias_skip_relu_kernel(x_ref, w_ref, b_ref, s_ref, o_ref):
    r = (jnp.dot(x_ref[...], w_ref[...], preferred_element_type=jnp.float32)
         + b_ref[...] + s_ref[...].astype(jnp.float32))
    o_ref[...] = jnp.maximum(r, 0.0).astype(o_ref.dtype)


def matmul_bn(x, w, scale, shift, *, relu, skip=None, out_dtype=jnp.bfloat16):
    """out = [relu]( x @ (w*scale) + shift [+ skip] ) with the whole weight
    (BN scale pre-folded into its columns) kept VMEM-resident."""
    M, K = x.shape
    N = w.shape[1]

    if scale is not None:
        w = w * scale[None, :]
    wb = w.astype(jnp.bfloat16)
    bias = (jnp.zeros((1, N), jnp.float32) if shift is None
            else shift.reshape(1, N).astype(jnp.float32))
    xb = x.astype(jnp.bfloat16)
    sk = None if skip is None else skip.astype(jnp.bfloat16)

    # Row tile: as large as the VMEM budget allows (<= 2048), a divisor of M
    # when possible (avoids any pad pass; M = N*H*W so this is the usual case).
    vlim = _vmem_limit_bytes()
    per_row = 2 * 2 * K + 2 * 4 * N + (2 * 2 * N if skip is not None else 0)
    budget = int(0.8 * vlim) - 2 * 2 * K * N - 2 * 4 * N
    cap = max(8, min(2048, budget // max(per_row, 1)))
    tm = _pick_tile_m(M, cap)
    if tm is None:                       # ragged M: pad rows (rare fallback)
        tm = min(cap, _round_up(M, 8))
        mp = _round_up(M, tm)
        xb = jnp.pad(xb, ((0, mp - M), (0, 0)))
        if sk is not None:
            sk = jnp.pad(sk, ((0, mp - M), (0, 0)))
    else:
        mp = M

    grid = (mp // tm,)
    x_spec = pl.BlockSpec((tm, K), lambda i: (i, 0))
    w_spec = pl.BlockSpec((K, N), lambda i: (0, 0))    # resident: constant idx
    b_spec = pl.BlockSpec((1, N), lambda i: (0, 0))
    o_spec = pl.BlockSpec((tm, N), lambda i: (i, 0))
    out_shape = jax.ShapeDtypeStruct((mp, N), out_dtype)
    cp = pltpu.CompilerParams(dimension_semantics=("parallel",),
                              vmem_limit_bytes=vlim)

    if skip is None:
        out = pl.pallas_call(
            functools.partial(_mm_bias_kernel, relu=relu),
            out_shape=out_shape, grid=grid,
            in_specs=[x_spec, w_spec, b_spec], out_specs=o_spec,
            compiler_params=cp,
        )(xb, wb, bias)
    else:
        assert relu, "fused skip path always applies ReLU (CORblock_S semantics)"
        s_spec = pl.BlockSpec((tm, N), lambda i: (i, 0))
        out = pl.pallas_call(
            _mm_bias_skip_relu_kernel,
            out_shape=out_shape, grid=grid,
            in_specs=[x_spec, w_spec, b_spec, s_spec], out_specs=o_spec,
            compiler_params=cp,
        )(xb, wb, bias, sk)
    return out if mp == M else out[:M]


# ----------------------------------------------------------------------------
# Kernel 2: fused 3x3 conv (pad=1, stride 1 or 2) + folded-BN bias + ReLU.
#   x_ref: (s*s, Hp, Wp, Cin)  parity-plane view of one padded image (s*s == 1
#                              for stride 1) -- resident in VMEM.
#   w_ref: (9, Cin, tn)        weight tile; constant across the batch axis.
#   b_ref: (1, tn)
#   o_ref: (1, Ho*Wo, tn)      flattened-spatial output slab.
# Per row-block of `rb` output rows the 9 taps are accumulated with
# (rb*Wo, Cin) x (Cin, tn) MXU dots (f32 accumulation); the loops are static
# (fully unrolled) so tap loads can overlap the dots.
# ----------------------------------------------------------------------------
def _conv3x3_kernel(x_ref, w_ref, b_ref, o_ref, *, stride, rb, ho, wo, cin):
    s = stride
    bias = b_ref[...]                                   # (1, tn) f32
    for blk in range(ho // rb):
        r0 = blk * rb
        acc = None
        for dh in range(3):
            ph, oh = dh % s, dh // s
            for dw in range(3):
                pw, ow = dw % s, dw // s
                tap = x_ref[ph * s + pw, oh + r0:oh + r0 + rb, ow:ow + wo, :]
                part = jnp.dot(tap.reshape(rb * wo, cin), w_ref[dh * 3 + dw],
                               preferred_element_type=jnp.float32)
                acc = part if acc is None else acc + part
        res = jnp.maximum(acc + bias, 0.0)
        o_ref[0, r0 * wo:(r0 + rb) * wo, :] = res.astype(o_ref.dtype)


def conv3x3_bn_relu(x, w_oihw, scale, shift, stride):
    n, h, w, c = x.shape
    cout = w_oihw.shape[0]
    assert h % stride == 0 and w % stride == 0
    ho, wo = h // stride, w // stride

    # (Cout, Cin, 3, 3) -> (9, Cin, Cout); BN scale folded into output columns.
    w_eff = (jnp.transpose(w_oihw, (2, 3, 1, 0)).reshape(9, c, cout)
             * scale[None, None, :]).astype(jnp.bfloat16)
    bias = shift.reshape(1, cout).astype(jnp.float32)

    xp = jnp.pad(x.astype(jnp.bfloat16), ((0, 0), (1, 1), (1, 1), (0, 0)))
    if stride == 1:
        # No parity-plane copy for stride 1: read the padded slab directly.
        nplanes, hp, wp = 1, h + 2, w + 2
        xv = xp
    else:
        # Space-to-depth parity planes: every stride-2 tap is a contiguous slice.
        nplanes, hp, wp = stride * stride, ho + 1, wo + 1
        planes = [xp[:, ph::stride, pw::stride, :]
                  for ph in range(stride) for pw in range(stride)]
        xv = jnp.stack(planes, axis=1).reshape(n * nplanes, hp, wp, c)

    # Cout tile: whole weight resident when it fits the generation-aware
    # budget, else 256/128-wide tiles (Cout axis is outermost in the grid).
    vlim = _vmem_limit_bytes()
    w_bytes = 9 * c * cout * 2
    if cout % 128 != 0 or w_bytes <= min(20 * 1024 * 1024, vlim // 4):
        tn = cout
    elif cout % 256 == 0:
        tn = 256
    else:
        tn = 128

    rb = _pick_row_block(ho, wo, tn)

    out = pl.pallas_call(
        functools.partial(_conv3x3_kernel,
                          stride=stride, rb=rb, ho=ho, wo=wo, cin=c),
        out_shape=jax.ShapeDtypeStruct((n, ho * wo, cout), jnp.bfloat16),
        # Cout axis outermost: the weight block index is constant across the
        # inner batch axis, so each weight tile is DMA'd once (not per image).
        grid=(cout // tn, n),
        in_specs=[
            pl.BlockSpec((nplanes, hp, wp, c), lambda j, b: (b, 0, 0, 0)),
            pl.BlockSpec((9, c, tn), lambda j, b: (0, 0, j)),
            pl.BlockSpec((1, tn), lambda j, b: (0, j)),
        ],
        out_specs=pl.BlockSpec((1, ho * wo, tn), lambda j, b: (b, 0, j)),
        compiler_params=pltpu.CompilerParams(
            dimension_semantics=("parallel", "parallel"),
            vmem_limit_bytes=vlim),
    )(xv, w_eff, bias)
    return out.reshape(n, ho, wo, cout)


# ----------------------------------------------------------------------------
# Glue: weight layout conversion and BN folding
# ----------------------------------------------------------------------------
def _w1x1_to_mat(w):                 # (Cout, Cin, 1, 1) -> (Cin, Cout)
    return jnp.transpose(w[:, :, 0, 0], (1, 0))


def _fold_bn(bn):
    g, b, m, v = bn
    s = g / jnp.sqrt(v + _EPS)
    return s, b - m * s


# ----------------------------------------------------------------------------
# CORblock_S forward (Pallas)
# ----------------------------------------------------------------------------
def corblock_s_pallas(inp_nchw, params, times):
    x = jnp.transpose(inp_nchw, (0, 2, 3, 1)).astype(jnp.float32)   # NHWC
    n = x.shape[0]
    cout = params['w_input'].shape[0]
    c4 = params['w1'].shape[0]

    h, w = x.shape[1], x.shape[2]
    # conv_input: 1x1, no BN, no ReLU
    x = matmul_bn(x.reshape(-1, x.shape[-1]), _w1x1_to_mat(params['w_input']),
                  None, None, relu=False).reshape(n, h, w, cout)

    for t in range(times):
        h, w = x.shape[1], x.shape[2]
        if t == 0:
            stride = 2
            xs = x[:, ::2, ::2, :]                       # 1x1 stride-2 skip conv
            s_sk, b_sk = _fold_bn(params['norm_skip'])
            skip = matmul_bn(xs.reshape(-1, cout), _w1x1_to_mat(params['w_skip']),
                             s_sk, b_sk, relu=False)
        else:
            stride = 1
            skip = x.reshape(-1, cout)

        # conv1 (1x1) + norm1_t + relu
        s1, b1 = _fold_bn(params[f'norm1_{t}'])
        x = matmul_bn(x.reshape(-1, cout), _w1x1_to_mat(params['w1']),
                      s1, b1, relu=True).reshape(n, h, w, c4)

        # conv2 (3x3, stride, pad=1) + norm2_t + relu  (fused row-block kernel)
        s2, b2 = _fold_bn(params[f'norm2_{t}'])
        x = conv3x3_bn_relu(x, params['w2'], s2, b2, stride)
        ho, wo = x.shape[1], x.shape[2]

        # conv3 (1x1) + norm3_t + residual add + relu
        s3, b3 = _fold_bn(params[f'norm3_{t}'])
        last = (t == times - 1)
        x = matmul_bn(x.reshape(-1, c4), _w1x1_to_mat(params['w3']),
                      s3, b3, relu=True, skip=skip,
                      out_dtype=jnp.float32 if last else jnp.bfloat16
                      ).reshape(n, ho, wo, cout)

    return jnp.transpose(x.astype(jnp.float32), (0, 3, 1, 2))       # NCHW


# ----------------------------------------------------------------------------
# Pure-JAX reference (lax.conv, f32 HIGHEST precision) for correctness check
# ----------------------------------------------------------------------------
def corblock_s_ref(inp_nchw, params, times):
    def conv(x, w, stride, pad):
        return jax.lax.conv_general_dilated(
            x, jnp.transpose(w, (2, 3, 1, 0)), (stride, stride), pad,
            dimension_numbers=('NHWC', 'HWIO', 'NHWC'),
            precision=jax.lax.Precision.HIGHEST)

    def bn(x, p):
        g, b, m, v = p
        return (x - m) / jnp.sqrt(v + _EPS) * g + b

    x = jnp.transpose(inp_nchw, (0, 2, 3, 1)).astype(jnp.float32)
    x = conv(x, params['w_input'], 1, 'VALID')
    for t in range(times):
        if t == 0:
            skip = bn(conv(x, params['w_skip'], 2, 'VALID'), params['norm_skip'])
            stride = 2
        else:
            skip = x
            stride = 1
        x = jax.nn.relu(bn(conv(x, params['w1'], 1, 'VALID'), params[f'norm1_{t}']))
        x = jax.nn.relu(bn(conv(x, params['w2'], stride, ((1, 1), (1, 1))),
                           params[f'norm2_{t}']))
        x = bn(conv(x, params['w3'], 1, 'VALID'), params[f'norm3_{t}'])
        x = jax.nn.relu(x + skip)
    return jnp.transpose(x, (0, 3, 1, 2))


# ----------------------------------------------------------------------------
# Deterministic parameter init (shapes from CORblock_S.__init__, scale=4)
# ----------------------------------------------------------------------------
def init_params(key, in_ch, out_ch, times, scale=4):
    c4 = out_ch * scale
    keys = iter(jax.random.split(key, 64))

    def w(shape):
        return 0.1 * jax.random.normal(next(keys), shape, dtype=jnp.float32)

    def bn(c):
        g = 1.0 + 0.1 * jax.random.normal(next(keys), (c,), dtype=jnp.float32)
        b = 0.1 * jax.random.normal(next(keys), (c,), dtype=jnp.float32)
        m = 0.05 * jax.random.normal(next(keys), (c,), dtype=jnp.float32)
        v = 1.0 + 0.1 * jax.random.uniform(next(keys), (c,), dtype=jnp.float32)
        return (g, b, m, v)

    p = {}
    p['w_input'] = w((out_ch, in_ch, 1, 1))     # conv_input
    p['w_skip'] = w((out_ch, out_ch, 1, 1))     # skip (1x1, stride 2)
    p['w1'] = w((c4, out_ch, 1, 1))             # conv1
    p['w2'] = w((c4, c4, 3, 3))                 # conv2
    p['w3'] = w((out_ch, c4, 1, 1))             # conv3
    p['norm_skip'] = bn(out_ch)
    for t in range(times):
        p[f'norm1_{t}'] = bn(c4)
        p[f'norm2_{t}'] = bn(c4)
        p[f'norm3_{t}'] = bn(out_ch)
    return p


if __name__ == "__main__":
    in_ch, out_ch, times = 4, 8, 2
    key = jax.random.PRNGKey(0)
    pkey, xkey = jax.random.split(key)
    params = init_params(pkey, in_ch, out_ch, times)
    x = jax.random.normal(xkey, (2, in_ch, 16, 16), dtype=jnp.float32)

    out = corblock_s_pallas(x, params, times)
    out = jax.block_until_ready(out)

    ref = corblock_s_ref(x, params, times)
    assert out.shape == ref.shape == (2, out_ch, 8, 8), (out.shape, ref.shape)
    # Tolerance accounts for the bf16 MXU path (f32 accumulation).
    max_err = float(jnp.max(jnp.abs(out - ref)))
    assert max_err < 3e-2, f"max abs error too large: {max_err}"
    print("KERNEL_OK")
</pallas_src>

<mosaic_0001>
module attributes {stable_mosaic.version = 11 : i64} {
  func.func @_mm_bias_kernel(%arg0: i32, %arg1: memref<256x4xbf16, #tpu.memory_space<vmem>>, %arg2: memref<4x8xbf16, #tpu.memory_space<vmem>>, %arg3: memref<1x8xf32, #tpu.memory_space<vmem>>, %arg4: memref<256x8xbf16, #tpu.memory_space<vmem>>) attributes {dimension_semantics = [#tpu.dimension_semantics<parallel>], iteration_bounds = array<i64: 2>, scalar_prefetch = 0 : i64, scratch_operands = 0 : i64, tpu.core_type = #tpu.core_type<tc>, window_params = [{transform_indices = @transform_0, window_bounds = array<i64: 256, 4>}, {pipeline_mode = #tpu.pipeline_mode<synchronous>, transform_indices = @transform_1, window_bounds = array<i64: 4, 8>}, {pipeline_mode = #tpu.pipeline_mode<synchronous>, transform_indices = @transform_2, window_bounds = array<i64: 1, 8>}, {transform_indices = @transform_3, window_bounds = array<i64: 256, 8>}]} {
    %c0 = arith.constant 0 : index
    %c0_0 = arith.constant 0 : index
    %0 = vector.load %arg1[%c0, %c0_0] : memref<256x4xbf16, #tpu.memory_space<vmem>>, vector<256x4xbf16>
    %c0_1 = arith.constant 0 : index
    %c0_2 = arith.constant 0 : index
    %1 = vector.load %arg2[%c0_1, %c0_2] : memref<4x8xbf16, #tpu.memory_space<vmem>>, vector<4x8xbf16>
    %cst = arith.constant dense<0.000000e+00> : vector<256x8xf32>
    %2 = tpu.matmul %0, %1, %cst {dimension_numbers = #tpu.dot_dimension_numbers<[1], [0], [0], [1], [0, 0, 1, 1], [], []>} : vector<256x4xbf16>, vector<4x8xbf16>, vector<256x8xf32> -> vector<256x8xf32>
    %c0_3 = arith.constant 0 : index
    %c0_4 = arith.constant 0 : index
    %3 = vector.load %arg3[%c0_3, %c0_4] : memref<1x8xf32, #tpu.memory_space<vmem>>, vector<1x8xf32>
    %4 = vector.broadcast %3 : vector<1x8xf32> to vector<256x8xf32>
    %5 = arith.addf %2, %4 : vector<256x8xf32>
    %6 = arith.truncf %5 : vector<256x8xf32> to vector<256x8xbf16>
    %c0_5 = arith.constant 0 : index
    %c0_6 = arith.constant 0 : index
    %7 = vector.load %arg4[%c0_5, %c0_6] : memref<256x8xbf16, #tpu.memory_space<vmem>>, vector<256x8xbf16>
    tpu.vector_store %arg4[%c0_5, %c0_6], %6 {strides = array<i32>} : memref<256x8xbf16, #tpu.memory_space<vmem>>, vector<256x8xbf16>,
    return
  }
  func.func @transform_0(%arg0: i32) -> (i32, i32) {
    %c0_i32 = arith.constant 0 : i32
    %c0_i32_0 = arith.constant 0 : i32
    return %arg0, %c0_i32 : i32, i32
  }
  func.func @transform_1(%arg0: i32) -> (i32, i32) {
    %c0_i32 = arith.constant 0 : i32
    %c0_i32_0 = arith.constant 0 : i32
    %c0_i32_1 = arith.constant 0 : i32
    return %c0_i32, %c0_i32_0 : i32, i32
  }
  func.func @transform_2(%arg0: i32) -> (i32, i32) {
    %c0_i32 = arith.constant 0 : i32
    %c0_i32_0 = arith.constant 0 : i32
    %c0_i32_1 = arith.constant 0 : i32
    return %c0_i32, %c0_i32_0 : i32, i32
  }
  func.func @transform_3(%arg0: i32) -> (i32, i32) {
    %c0_i32 = arith.constant 0 : i32
    %c0_i32_0 = arith.constant 0 : i32
    return %arg0, %c0_i32 : i32, i32
  }
}

</mosaic_0001>

<bundles_post_ra>
// kernel: tpu_custom_call.1
= control target key start
LH: loop header
LB: loop body
LE: loop exit
PB: predicated region body
PF: predicated region fallthrough
CT: control target
= control target key end

     0   :  { %s941_s12 = smov 0   ;;  %s1105_s0 = inlined_call_operand.vmem [shape: bf16[512,4], index: 0, kind: input, shape index: {}]   ;;  %s1106_s1 = inlined_call_operand.vmem [shape: bf16[4,8], index: 1, kind: input, shape index: {}]   ;;  %s1107_s2 = inlined_call_operand.vmem [shape: f32[1,8], index: 2, kind: input, shape index: {}]   ;;  %s1108_s3 = inlined_call_operand.vmem [shape: bf16[512,8], index: 3, kind: output, shape index: {}]  }
   0x1 LB: > { %s726_s13 = sadd.s32 4294967295, %s919_s12   ;;  %p730_p0 = scmp.ge.s32.totalorder %s919_s12, 1  ;;  %s919_s12 = sphi %s941_s12, %s13_s12  }
   0x2   : > { %p138_p1 = scmp.lt.s32.totalorder %s919_s12, 3 }
   0x4   : > { %p139_p2 = pnand %p730_p0, %p138_p1 }
   0x5   : > { %v207_v0 = vld [vmem:[%s1106_s1] sm:$0x3] (!%p139_p2)  ;;  %vm344_vm0 = vcmask (!%p139_p2), 1041408   ;;  %s731_s16 = sshll.u32 (!%p139_p2), %s726_s13, 5  ;;  %vm295_vm1 = vcmask (!%p139_p2), 31744   ;;  %vm637_vm2 = vcmask (!%p139_p2), 60416  }
   0x6   : > { %142 = sbr.rel (%p139_p2) target bundleno = 263 (0x107), region = 32  ;;  %887 = vmatprep.subr.msk.bf16.mxu0 (!%p139_p2), %vm344_vm0, %v207_v0  ;;  %888 = vmatprep.subr.msk.bf16.mxu1 (!%p139_p2), %vm344_vm0, %v207_v0  ;;  %v346_v1 = vsel (!%p139_p2), %vm344_vm0, %v207_v0, 0  ;;  %p163_p3 = scmp.lt.s32.totalorder (!%p139_p2), %s731_s16, 63  ;;  %v997_v18 = vld [vmem:[%s1107_s2] ss:$0 sm:$0xff] (!%p139_p2) }
   0x7   : > { %852 = vmatpush3.bf16.msra.mxu0 (!%p139_p2), %v346_v1  ;;  %886 = vmatpush3.bf16.msra.mxu1 (!%p139_p2), %v346_v1 }
   0xd   : > { %s1110_s16 = smov (!%p163_p3, %s731_s16), 63 }
   0xe   : > { %s732_s17 = sshll.u32 %s1110_s16, 2 }
   0xf   : > { %s960_s20 = scalar_lea.vmem %s1105_s0, %s732_s17  ;;  %s1005_s25 = scalar_lea.vmem %s1108_s3, %s732_s17 }
  0x10   : > { %v897_v2 = vld [vmem:[%s960_s20] sm:$0xff]   ;;  %v899_v4 = vld [vmem:[%s960_s20 + $0x8] sm:$0xff]   ;;  %v901_v6 = vld [vmem:[%s960_s20 + $0x10] sm:$0xff]  }
  0x11   : > { %v898_v3 = vld [vmem:[%s960_s20 + $0x40] sm:$0xff]   ;;  %853 = vmatprep.mubr.msk.bf16.mxu0 %vm295_vm1, %v897_v2  ;;  %v900_v5 = vld [vmem:[%s960_s20 + $0x48] sm:$0xff]   ;;  %v902_v7 = vld [vmem:[%s960_s20 + $0x50] sm:$0xff]  }
  0x12   : > { %869 = vmatprep.mubr.msk.bf16.mxu1 %vm295_vm1, %v898_v3  ;;  %854 = vmatmul.mubr.msk.bf16.vlgmr.msra.gmra.mrb[0].mxu0 %vm295_vm1, %v899_v4  ;;  %v903_v8 = vld [vmem:[%s960_s20 + $0x18] sm:$0xff]   ;;  %v905_v10 = vld [vmem:[%s960_s20 + $0x20] sm:$0xff]   ;;  %v907_v12 = vld [vmem:[%s960_s20 + $0x28] sm:$0xff]  }
  0x13   : > { %870 = vmatmul.mubr.msk.bf16.vlgmr.msra.gmra.mrb[0].mxu1 %vm295_vm1, %v900_v5  ;;  %857 = vmatprep.mubr.msk.bf16.mxu0 %vm295_vm1, %v901_v6  ;;  %v904_v9 = vld [vmem:[%s960_s20 + $0x58] sm:$0xff]   ;;  %v906_v11 = vld [vmem:[%s960_s20 + $0x60] sm:$0xff]   ;;  %v908_v13 = vld [vmem:[%s960_s20 + $0x68] sm:$0xff]  }
  0x14   : > { %873 = vmatprep.mubr.msk.bf16.mxu1 %vm295_vm1, %v902_v7  ;;  %v909_v14 = vld [vmem:[%s960_s20 + $0x30] sm:$0xff]   ;;  %v911_v16 = vld [vmem:[%s960_s20 + $0x38] sm:$0xff]  }
  0x15   : > { %v910_v15 = vld [vmem:[%s960_s20 + $0x70] sm:$0xff]   ;;  %v912_v17 = vld [vmem:[%s960_s20 + $0x78] sm:$0xff]  }
  0x1a   : > { %858 = vmatmul.mubr.msk.bf16.gmra.mrb[4].mxu0 %vm295_vm1, %v903_v8 }
  0x1b   : > { %874 = vmatmul.mubr.msk.bf16.gmra.mrb[4].mxu1 %vm295_vm1, %v904_v9  ;;  %861 = vmatprep.mubr.msk.bf16.mxu0 %vm295_vm1, %v905_v10 }
  0x1c   : > { %877 = vmatprep.mubr.msk.bf16.mxu1 %vm295_vm1, %v906_v11 }
  0x22   : > { %862 = vmatmul.mubr.msk.bf16.gmra.mrb[8].mxu0 %vm295_vm1, %v907_v12 }
  0x23   : > { %878 = vmatmul.mubr.msk.bf16.gmra.mrb[8].mxu1 %vm295_vm1, %v908_v13  ;;  %865 = vmatprep.mubr.msk.bf16.mxu0 %vm295_vm1, %v909_v14 }
  0x24   : > { %881 = vmatprep.mubr.msk.bf16.mxu1 %vm295_vm1, %v910_v15 }
  0x2a   : > { %866 = vmatmul.mubr.msk.bf16.gmra.mrb[12].mxu0 %vm295_vm1, %v911_v16 }
  0x2b   : > { %882 = vmatmul.mubr.msk.bf16.gmra.mrb[12].mxu1 %vm295_vm1, %v912_v17 }
  0xe5   : > { %v855_v19 = vpop.f32.mrb[0].mxu0 }
  0xe6   : > { %v391_v20 = vadd.f32 %v855_v19, %v997_v18  ;;  %v871_v21 = vpop.f32.mrb[0].mxu1  ;;  %v382_v22 = vpop.f32.mrb[1].mxu0 }
  0xe7   : > { %v455_v23 = vadd.f32 %v871_v21, %v997_v18  ;;  %v383_v24 = vadd.f32 %v997_v18, %v382_v22  ;;  %v446_v25 = vpop.f32.mrb[1].mxu1  ;;  %v856_v26 = vpop.f32.mrb[2].mxu0 }
  0xe8   : > { %v804_v27 = vpack.c.bf16 %v391_v20, %v391_v20  ;;  %v447_v28 = vadd.f32 %v997_v18, %v446_v25  ;;  %v394_v29 = vadd.f32 %v856_v26, %v997_v18  ;;  %v872_v30 = vpop.f32.mrb[2].mxu1  ;;  %v385_v31 = vpop.f32.mrb[3].mxu0 }
  0xe9   : > { %v820_v32 = vpack.c.bf16 %v455_v23, %v455_v23  ;;  %v802_v33 = vpack.c.bf16 %v383_v24, %v383_v24  ;;  %v458_v34 = vadd.f32 %v872_v30, %v997_v18  ;;  %v386_v35 = vadd.f32 %v997_v18, %v385_v31  ;;  %v449_v36 = vpop.f32.mrb[3].mxu1 }
  0xea   : > { %640 = vst.msk [vmem:[%s1005_s25 + $0x8] sm:$0xf] %vm637_vm2, %v804_v27  ;;  %v818_v37 = vpack.c.bf16 %v447_v28, %v447_v28  ;;  %v805_v38 = vpack.c.bf16 %v394_v29, %v394_v29  ;;  %v450_v39 = vadd.f32 %v997_v18, %v449_v36 }
  0xeb   : > { %656 = vst.msk [vmem:[%s1005_s25 + $0x48] sm:$0xf] %vm637_vm2, %v820_v32  ;;  %638 = vst.msk [vmem:[%s1005_s25] sm:$0xf] %vm637_vm2, %v802_v33  ;;  %v821_v40 = vpack.c.bf16 %v458_v34, %v458_v34  ;;  %v803_v41 = vpack.c.bf16 %v386_v35, %v386_v35 }
  0xec   : > { %654 = vst.msk [vmem:[%s1005_s25 + $0x40] sm:$0xf] %vm637_vm2, %v818_v37  ;;  %641 = vst.msk [vmem:[%s1005_s25 + $0xc] sm:$0xf] %vm637_vm2, %v805_v38  ;;  %v819_v42 = vpack.c.bf16 %v450_v39, %v450_v39 }
  0xed   : > { %657 = vst.msk [vmem:[%s1005_s25 + $0x4c] sm:$0xf] %vm637_vm2, %v821_v40  ;;  %639 = vst.msk [vmem:[%s1005_s25 + $0x4] sm:$0xf] %vm637_vm2, %v803_v41  ;;  %v859_v43 = vpop.f32.mrb[4].mxu0 }
  0xee   : > { %655 = vst.msk [vmem:[%s1005_s25 + $0x44] sm:$0xf] %vm637_vm2, %v819_v42  ;;  %v407_v44 = vadd.f32 %v859_v43, %v997_v18  ;;  %v875_v45 = vpop.f32.mrb[4].mxu1  ;;  %v398_v46 = vpop.f32.mrb[5].mxu0 }
  0xef   : > { %v471_v47 = vadd.f32 %v875_v45, %v997_v18  ;;  %v399_v48 = vadd.f32 %v997_v18, %v398_v46  ;;  %v462_v49 = vpop.f32.mrb[5].mxu1  ;;  %v860_v50 = vpop.f32.mrb[6].mxu0 }
  0xf0   : > { %v808_v51 = vpack.c.bf16 %v407_v44, %v407_v44  ;;  %v463_v52 = vadd.f32 %v997_v18, %v462_v49  ;;  %v410_v53 = vadd.f32 %v860_v50, %v997_v18  ;;  %v876_v54 = vpop.f32.mrb[6].mxu1  ;;  %v401_v55 = vpop.f32.mrb[7].mxu0 }
  0xf1   : > { %v824_v56 = vpack.c.bf16 %v471_v47, %v471_v47  ;;  %v806_v57 = vpack.c.bf16 %v399_v48, %v399_v48  ;;  %v474_v58 = vadd.f32 %v876_v54, %v997_v18  ;;  %v402_v59 = vadd.f32 %v997_v18, %v401_v55  ;;  %v465_v60 = vpop.f32.mrb[7].mxu1 }
  0xf2   : > { %644 = vst.msk [vmem:[%s1005_s25 + $0x18] sm:$0xf] %vm637_vm2, %v808_v51  ;;  %v822_v61 = vpack.c.bf16 %v463_v52, %v463_v52  ;;  %v809_v62 = vpack.c.bf16 %v410_v53, %v410_v53  ;;  %v466_v63 = vadd.f32 %v997_v18, %v465_v60 }
  0xf3   : > { %660 = vst.msk [vmem:[%s1005_s25 + $0x58] sm:$0xf] %vm637_vm2, %v824_v56  ;;  %642 = vst.msk [vmem:[%s1005_s25 + $0x10] sm:$0xf] %vm637_vm2, %v806_v57  ;;  %v825_v0 = vpack.c.bf16 %v474_v58, %v474_v58  ;;  %v807_v1 = vpack.c.bf16 %v402_v59, %v402_v59 }
  0xf4   : > { %658 = vst.msk [vmem:[%s1005_s25 + $0x50] sm:$0xf] %vm637_vm2, %v822_v61  ;;  %645 = vst.msk [vmem:[%s1005_s25 + $0x1c] sm:$0xf] %vm637_vm2, %v809_v62  ;;  %v823_v2 = vpack.c.bf16 %v466_v63, %v466_v63 }
  0xf5   : > { %661 = vst.msk [vmem:[%s1005_s25 + $0x5c] sm:$0xf] %vm637_vm2, %v825_v0  ;;  %643 = vst.msk [vmem:[%s1005_s25 + $0x14] sm:$0xf] %vm637_vm2, %v807_v1  ;;  %v863_v3 = vpop.f32.mrb[8].mxu0 }
  0xf6   : > { %659 = vst.msk [vmem:[%s1005_s25 + $0x54] sm:$0xf] %vm637_vm2, %v823_v2  ;;  %v423_v4 = vadd.f32 %v863_v3, %v997_v18  ;;  %v879_v5 = vpop.f32.mrb[8].mxu1  ;;  %v414_v6 = vpop.f32.mrb[9].mxu0 }
  0xf7   : > { %v487_v7 = vadd.f32 %v879_v5, %v997_v18  ;;  %v415_v8 = vadd.f32 %v997_v18, %v414_v6  ;;  %v478_v9 = vpop.f32.mrb[9].mxu1  ;;  %v864_v10 = vpop.f32.mrb[10].mxu0 }
  0xf8   : > { %v812_v11 = vpack.c.bf16 %v423_v4, %v423_v4  ;;  %v479_v12 = vadd.f32 %v997_v18, %v478_v9  ;;  %v426_v13 = vadd.f32 %v864_v10, %v997_v18  ;;  %v880_v14 = vpop.f32.mrb[10].mxu1  ;;  %v417_v15 = vpop.f32.mrb[11].mxu0 }
  0xf9   : > { %v828_v16 = vpack.c.bf16 %v487_v7, %v487_v7  ;;  %v810_v17 = vpack.c.bf16 %v415_v8, %v415_v8  ;;  %v490_v19 = vadd.f32 %v880_v14, %v997_v18  ;;  %v418_v20 = vadd.f32 %v997_v18, %v417_v15  ;;  %v481_v21 = vpop.f32.mrb[11].mxu1 }
  0xfa   : > { %648 = vst.msk [vmem:[%s1005_s25 + $0x28] sm:$0xf] %vm637_vm2, %v812_v11  ;;  %v826_v22 = vpack.c.bf16 %v479_v12, %v479_v12  ;;  %v813_v23 = vpack.c.bf16 %v426_v13, %v426_v13  ;;  %v482_v24 = vadd.f32 %v997_v18, %v481_v21 }
  0xfb   : > { %664 = vst.msk [vmem:[%s1005_s25 + $0x68] sm:$0xf] %vm637_vm2, %v828_v16  ;;  %646 = vst.msk [vmem:[%s1005_s25 + $0x20] sm:$0xf] %vm637_vm2, %v810_v17  ;;  %v829_v25 = vpack.c.bf16 %v490_v19, %v490_v19  ;;  %v811_v26 = vpack.c.bf16 %v418_v20, %v418_v20 }
  0xfc   : > { %662 = vst.msk [vmem:[%s1005_s25 + $0x60] sm:$0xf] %vm637_vm2, %v826_v22  ;;  %649 = vst.msk [vmem:[%s1005_s25 + $0x2c] sm:$0xf] %vm637_vm2, %v813_v23  ;;  %v827_v27 = vpack.c.bf16 %v482_v24, %v482_v24 }
  0xfd   : > { %665 = vst.msk [vmem:[%s1005_s25 + $0x6c] sm:$0xf] %vm637_vm2, %v829_v25  ;;  %647 = vst.msk [vmem:[%s1005_s25 + $0x24] sm:$0xf] %vm637_vm2, %v811_v26  ;;  %v867_v28 = vpop.f32.mrb[12].mxu0 }
  0xfe   : > { %663 = vst.msk [vmem:[%s1005_s25 + $0x64] sm:$0xf] %vm637_vm2, %v827_v27  ;;  %v439_v29 = vadd.f32 %v867_v28, %v997_v18  ;;  %v883_v30 = vpop.f32.mrb[12].mxu1  ;;  %v430_v31 = vpop.f32.mrb[13].mxu0 }
  0xff   : > { %v503_v32 = vadd.f32 %v883_v30, %v997_v18  ;;  %v431_v33 = vadd.f32 %v997_v18, %v430_v31  ;;  %v494_v34 = vpop.f32.mrb[13].mxu1  ;;  %v868_v35 = vpop.f32.mrb[14].mxu0 }
 0x100   : > { %v816_v36 = vpack.c.bf16 %v439_v29, %v439_v29  ;;  %v495_v37 = vadd.f32 %v997_v18, %v494_v34  ;;  %v442_v38 = vadd.f32 %v868_v35, %v997_v18  ;;  %v884_v39 = vpop.f32.mrb[14].mxu1  ;;  %v433_v40 = vpop.f32.mrb[15].mxu0 }
 0x101   : > { %v832_v41 = vpack.c.bf16 %v503_v32, %v503_v32  ;;  %v814_v42 = vpack.c.bf16 %v431_v33, %v431_v33  ;;  %v506_v43 = vadd.f32 %v884_v39, %v997_v18  ;;  %v434_v44 = vadd.f32 %v997_v18, %v433_v40  ;;  %v497_v45 = vpop.f32.mrb[15].mxu1 }
 0x102   : > { %652 = vst.msk [vmem:[%s1005_s25 + $0x38] sm:$0xf] %vm637_vm2, %v816_v36  ;;  %v830_v46 = vpack.c.bf16 %v495_v37, %v495_v37  ;;  %v817_v47 = vpack.c.bf16 %v442_v38, %v442_v38  ;;  %v498_v48 = vadd.f32 %v997_v18, %v497_v45 }
 0x103   : > { %668 = vst.msk [vmem:[%s1005_s25 + $0x78] sm:$0xf] %vm637_vm2, %v832_v41  ;;  %650 = vst.msk [vmem:[%s1005_s25 + $0x30] sm:$0xf] %vm637_vm2, %v814_v42  ;;  %v833_v49 = vpack.c.bf16 %v506_v43, %v506_v43  ;;  %v815_v50 = vpack.c.bf16 %v434_v44, %v434_v44 }
 0x104   : > { %666 = vst.msk [vmem:[%s1005_s25 + $0x70] sm:$0xf] %vm637_vm2, %v830_v46  ;;  %653 = vst.msk [vmem:[%s1005_s25 + $0x3c] sm:$0xf] %vm637_vm2, %v817_v47  ;;  %v831_v51 = vpack.c.bf16 %v498_v48, %v498_v48 }
 0x105   : > { %669 = vst.msk [vmem:[%s1005_s25 + $0x7c] sm:$0xf] %vm637_vm2, %v833_v49  ;;  %651 = vst.msk [vmem:[%s1005_s25 + $0x34] sm:$0xf] %vm637_vm2, %v815_v50 }
 0x106   : > { %667 = vst.msk [vmem:[%s1005_s25 + $0x74] sm:$0xf] %vm637_vm2, %v831_v51 }
 0x107 PF: > { %s13_s12 = sadd.s32 1, %s919_s12  }
 0x108   : > { %p10_p4 = scmp.ge.s32.totalorder %s13_s12, 4  }
 0x10a   :  { %12 = sbr.rel (!%p10_p4) target bundleno = 1 (0x1), region = 62 }

</bundles_post_ra>
